<compile_context>
chip_gen: v7x
topology: tpu7x:2x2x1
jax: 0.10.0
libtpu: 0.0.40
codegen_flags: <defaults>
</compile_context>

<pallas_src>
import functools
import numpy as np
import jax
import jax.numpy as jnp
from jax.experimental import pallas as pl
from jax.experimental.pallas import tpu as pltpu

PAD_ID = 0
IGNORE_INDEX = -100


def _round_up(a, b):
    return (a + b - 1) // b * b


# ---------------------------------------------------------------------------
# Kernel 1: affine transformation (query_/knowledge_affine_transformation)
#   length = sum(padding_mask) - 1
#   mask'  = arange(S) < length
#   out    = sum_s( relu(x @ W + b) * mask' ) / length
# Tiled: grid=(batch_tiles [parallel], seq_tiles [arbitrary/reduction]),
# (tb, H) f32 accumulator in VMEM scratch, bf16 inputs to the MXU.
# ---------------------------------------------------------------------------
def _affine_kernel(x_ref, len_ref, w_ref, b_ref, out_ref, acc_ref):
    s = pl.program_id(1)

    @pl.when(s == 0)
    def _():
        acc_ref[...] = jnp.zeros_like(acc_ref)

    x = x_ref[...]              # (tb, ts, H) bf16
    w = w_ref[...]              # (H, H)      bf16
    b = b_ref[...]              # (1, H)      f32
    length = len_ref[...]       # (tb, 1)     f32  (= sum(padding_mask) - 1)
    tb, ts, _ = x.shape

    # (tb, ts, H) @ (H, H) contracting last axis — keeps H on lanes, no reshape copy
    t = jax.lax.dot_general(x, w, (((2,), (0,)), ((), ())),
                            preferred_element_type=jnp.float32)
    t = jnp.maximum(t + b, 0.0)

    pos = jax.lax.broadcasted_iota(jnp.float32, (tb, ts), 1) + s * ts
    new_mask = (pos < length).astype(jnp.float32)                 # (tb, ts)
    acc_ref[...] += jnp.sum(t * new_mask[:, :, None], axis=1)

    @pl.when(s == pl.num_programs(1) - 1)
    def _():
        # guard only the divide (reference divides by length directly; the guard
        # only changes degenerate all-pad rows that would otherwise NaN)
        denom = jnp.where(length > 0.0, length, 1.0)
        out_ref[...] = acc_ref[...] / denom


def affine_transform(x, padding_mask, w_bf16, b, tb_max=8, ts_max=512):
    B, S, H = x.shape
    length = (jnp.sum(padding_mask.astype(jnp.float32), axis=1) - 1.0).reshape(B, 1)

    tb = B if B <= tb_max else tb_max
    Bp = _round_up(B, tb)
    ts = S if S <= ts_max else ts_max
    Sp = _round_up(S, ts)

    xb = x.astype(jnp.bfloat16)
    if Bp > B or Sp > S:
        xb = jnp.pad(xb, ((0, Bp - B), (0, Sp - S), (0, 0)))
        length = jnp.pad(length, ((0, Bp - B), (0, 0)), constant_values=1.0)

    n_b, n_s = Bp // tb, Sp // ts
    out = pl.pallas_call(
        _affine_kernel,
        out_shape=jax.ShapeDtypeStruct((Bp, H), jnp.float32),
        grid=(n_b, n_s),
        in_specs=[pl.BlockSpec((tb, ts, H), lambda i, s: (i, s, 0)),
                  pl.BlockSpec((tb, 1), lambda i, s: (i, 0)),
                  pl.BlockSpec((H, H), lambda i, s: (0, 0)),
                  pl.BlockSpec((1, H), lambda i, s: (0, 0))],
        out_specs=pl.BlockSpec((tb, H), lambda i, s: (i, 0)),
        scratch_shapes=[pltpu.VMEM((tb, H), jnp.float32)],
        compiler_params=pltpu.CompilerParams(
            dimension_semantics=("parallel", "arbitrary")),
    )(xb, length, w_bf16, b.reshape(1, H).astype(jnp.float32))
    return out[:B]


# ---------------------------------------------------------------------------
# Kernel 2: lm_head matmul + CrossEntropyLoss(ignore_index)
# grid = (token_tiles [parallel], vocab_tiles [arbitrary]); online softmax with
# running (max, sum, target-logit) accumulators in VMEM; bf16 weight tiles are
# streamed/double-buffered instead of staging the full (H, V) weight + (N, V)
# logits/one-hot in VMEM.  Outputs per-token masked NLL; reduced in the wrapper.
# ---------------------------------------------------------------------------
def _lm_ce_kernel(x_ref, w_ref, tgt_ref, nll_ref, m_acc, l_acc, t_acc,
                  *, ignore_index, v_actual, vocab_padded):
    j = pl.program_id(1)

    @pl.when(j == 0)
    def _():
        m_acc[...] = jnp.full_like(m_acc, -jnp.inf)
        l_acc[...] = jnp.zeros_like(l_acc)
        t_acc[...] = jnp.zeros_like(t_acc)

    x = x_ref[...]                # (tt, H)  bf16 (already model_dim**-0.5 scaled)
    w = w_ref[...]                # (H, tv)  bf16
    tgt = tgt_ref[...]            # (tt, 1)  int32

    logits = jnp.dot(x, w, preferred_element_type=jnp.float32)    # (tt, tv) f32
    tt, tv = logits.shape

    col = jax.lax.broadcasted_iota(jnp.int32, (tt, tv), 1) + j * tv
    if vocab_padded:
        logits = jnp.where(col < v_actual, logits, -1e30)

    # target logit lives in exactly one vocab tile
    onehot = (col == tgt).astype(jnp.float32)
    t_acc[...] += jnp.sum(logits * onehot, axis=-1, keepdims=True)

    m_prev = m_acc[...]
    m_new = jnp.maximum(m_prev, jnp.max(logits, axis=-1, keepdims=True))
    l_acc[...] = (l_acc[...] * jnp.exp(m_prev - m_new)
                  + jnp.sum(jnp.exp(logits - m_new), axis=-1, keepdims=True))
    m_acc[...] = m_new

    @pl.when(j == pl.num_programs(1) - 1)
    def _():
        lse = m_acc[...] + jnp.log(l_acc[...])
        valid = (tgt != ignore_index).astype(jnp.float32)
        nll_ref[...] = (lse - t_acc[...]) * valid


def lm_head_cross_entropy(x_scaled, w_lm_bf16, targets, ignore_index,
                          tt_max=256, tv_max=2048):
    P, T, H = x_scaled.shape
    V = w_lm_bf16.shape[1]
    N = P * T

    tt = N if N <= tt_max else tt_max
    Np = _round_up(N, tt)
    tv = V if V <= tv_max else tv_max
    Vp = _round_up(V, tv)

    x2 = x_scaled.reshape(N, H).astype(jnp.bfloat16)
    tgt = targets.reshape(N, 1).astype(jnp.int32)
    if Np > N:
        x2 = jnp.pad(x2, ((0, Np - N), (0, 0)))
        tgt = jnp.pad(tgt, ((0, Np - N), (0, 0)), constant_values=ignore_index)
    w = w_lm_bf16
    if Vp > V:
        w = jnp.pad(w, ((0, 0), (0, Vp - V)))

    n_tt, n_tv = Np // tt, Vp // tv
    kernel = functools.partial(_lm_ce_kernel, ignore_index=ignore_index,
                               v_actual=V, vocab_padded=(Vp != V))
    nll = pl.pallas_call(
        kernel,
        out_shape=jax.ShapeDtypeStruct((Np, 1), jnp.float32),
        grid=(n_tt, n_tv),
        in_specs=[pl.BlockSpec((tt, H), lambda i, j: (i, 0)),
                  pl.BlockSpec((H, tv), lambda i, j: (0, j)),
                  pl.BlockSpec((tt, 1), lambda i, j: (i, 0))],
        out_specs=pl.BlockSpec((tt, 1), lambda i, j: (i, 0)),
        scratch_shapes=[pltpu.VMEM((tt, 1), jnp.float32)] * 3,
        compiler_params=pltpu.CompilerParams(
            dimension_semantics=("parallel", "arbitrary"),
            vmem_limit_bytes=48 * 1024 * 1024),
    )(x2, w, tgt)

    count = jnp.sum((targets.reshape(N) != ignore_index).astype(jnp.float32))
    # CrossEntropyLoss reduction='mean' over non-ignored targets
    return jnp.sum(nll) / jnp.maximum(count, 1.0)


# ---------------------------------------------------------------------------
# Kernel 3: fused cosine similarities.  Normalizes each feature matrix once,
# then: pos/pos cosines = rowwise dot (P,), pos/neg cosines = (P,H)x(H,N) MXU
# matmul — replaces the repeat_interleave/repeat duplication of (P*N, H) rows.
# ---------------------------------------------------------------------------
def _cos_fused_kernel(pe_ref, pd_ref, nd_ref, pp_ref, pn_ref):
    eps = 1e-8

    def _normalize(v):
        return v * jax.lax.rsqrt(
            jnp.maximum(jnp.sum(v * v, axis=-1, keepdims=True), eps * eps))

    pe_n = _normalize(pe_ref[...])      # (P, H)
    pd_n = _normalize(pd_ref[...])      # (P, H)
    nd_n = _normalize(nd_ref[...])      # (N, H)

    pp_ref[...] = jnp.sum(pe_n * pd_n, axis=-1, keepdims=True)          # (P, 1)
    pn_ref[...] = jax.lax.dot_general(pe_n, nd_n, (((1,), (1,)), ((), ())),
                                      preferred_element_type=jnp.float32)  # (P, N)


def cosine_features(pos_enc, pos_dec, neg_dec):
    P, H = pos_enc.shape
    N = neg_dec.shape[0]
    pp, pn = pl.pallas_call(
        _cos_fused_kernel,
        out_shape=(jax.ShapeDtypeStruct((P, 1), jnp.float32),
                   jax.ShapeDtypeStruct((P, N), jnp.float32)),
        grid=(1,),
        in_specs=[pl.BlockSpec((P, H), lambda i: (0, 0)),
                  pl.BlockSpec((P, H), lambda i: (0, 0)),
                  pl.BlockSpec((N, H), lambda i: (0, 0))],
        out_specs=(pl.BlockSpec((P, 1), lambda i: (0, 0)),
                   pl.BlockSpec((P, N), lambda i: (0, 0))),
    )(pos_enc, pos_dec, neg_dec)
    return pp[:, 0], pn


# ---------------------------------------------------------------------------
# Deterministic stand-in for the pretrained T5 encoder / decoder.
# TODO(synk): the pretrained T5ForConditionalGeneration stack (and .generate()) has
#             no Pallas equivalent without a checkpoint; replaced by a deterministic
#             embedding + dense stand-in that preserves shapes/masking semantics.
# ---------------------------------------------------------------------------
def encoder_fn(params, ids, attn_mask):
    emb = params["embed"][ids]                                             # (B, S, H)
    h = jnp.tanh(emb @ params["w_enc"] + params["b_enc"])
    return h * attn_mask.astype(jnp.float32)[:, :, None]


def decoder_fn(params, ids, attn_mask, enc_hidden, enc_mask):
    emb = params["embed"][ids]                                             # (B, T, H)
    em = enc_mask.astype(jnp.float32)
    ctx = jnp.sum(enc_hidden * em[:, :, None], axis=1) / jnp.maximum(
        jnp.sum(em, axis=1, keepdims=True), 1.0)
    h = jnp.tanh(emb @ params["w_dec"] + ctx[:, None, :] + params["b_dec"])
    return h * attn_mask.astype(jnp.float32)[:, :, None]


# ---------------------------------------------------------------------------
# KnowledgeGenerator.forward
# ---------------------------------------------------------------------------
def knowledge_generator_forward(params, query_ids, knowledge_input_ids,
                                knowledge_output_ids, p_n_tag,
                                pad_id=PAD_ID, ignore_index=IGNORE_INDEX,
                                loss_func="nce_loss"):
    hidden_size = params["w_q"].shape[0]
    num_samples = query_ids.shape[0]
    p_n_np = np.asarray(p_n_tag)
    positive_mask = p_n_np == 1
    negative_mask = p_n_np == 0
    pos_num = int(positive_mask.sum())
    neg_num = num_samples - pos_num

    # weights cast to bf16 once (halves DMA bytes, MXU-native on all TPU gens)
    w_q_bf = params["w_q"].astype(jnp.bfloat16)
    w_k_bf = params["w_k"].astype(jnp.bfloat16)
    w_lm_bf = params["w_lm"].astype(jnp.bfloat16)

    # ---- positive branch -------------------------------------------------
    positive_query_ids = query_ids[positive_mask]
    positive_query_attention_mask = positive_query_ids != pad_id
    positive_encoder_hidden_states = encoder_fn(params, positive_query_ids,
                                                positive_query_attention_mask)

    positive_knowledge_input_ids = knowledge_input_ids[positive_mask]
    positive_knowledge_output_ids = knowledge_output_ids[positive_mask]
    positive_knowledge_input_attention_mask = positive_knowledge_input_ids != pad_id
    positive_knowledge_input_attention_mask = (
        positive_knowledge_input_attention_mask.at[:, 0].set(True))

    positive_decoder_out = decoder_fn(params, positive_knowledge_input_ids,
                                      positive_knowledge_input_attention_mask,
                                      positive_encoder_hidden_states,
                                      positive_query_attention_mask)
    positive_decoder_last_layer = positive_decoder_out * (hidden_size ** -0.5)

    targets = jnp.where(positive_knowledge_output_ids == 0,
                        ignore_index, positive_knowledge_output_ids)
    positive_nll_loss = lm_head_cross_entropy(positive_decoder_last_layer,
                                              w_lm_bf, targets, ignore_index)

    if pos_num == num_samples:
        return {"total_loss": positive_nll_loss, "nll_loss": positive_nll_loss}

    # ---- negative branch -------------------------------------------------
    negative_query_ids = query_ids[negative_mask]
    negative_query_attention_mask = negative_query_ids != pad_id
    negative_encoder_hidden_states = encoder_fn(params, negative_query_ids,
                                                negative_query_attention_mask)

    negative_knowledge_input_ids = knowledge_input_ids[negative_mask]
    negative_knowledge_input_attention_mask = negative_knowledge_input_ids != pad_id
    negative_knowledge_input_attention_mask = (
        negative_knowledge_input_attention_mask.at[:, 0].set(True))

    negative_decoder_out = decoder_fn(params, negative_knowledge_input_ids,
                                      negative_knowledge_input_attention_mask,
                                      negative_encoder_hidden_states,
                                      negative_query_attention_mask)
    negative_decoder_last_layer = negative_decoder_out * (hidden_size ** -0.5)

    # ---- affine transformations (Pallas, tiled) ----------------------------
    pos_enc_feat = affine_transform(positive_encoder_hidden_states,
                                    positive_query_attention_mask,
                                    w_q_bf, params["b_q"])
    pos_dec_feat = affine_transform(positive_decoder_last_layer,
                                    positive_knowledge_input_attention_mask,
                                    w_k_bf, params["b_k"])
    neg_dec_feat = affine_transform(negative_decoder_last_layer,
                                    negative_knowledge_input_attention_mask,
                                    w_k_bf, params["b_k"])

    # ---- cosine similarities (fused Pallas kernel) --------------------------
    # pp: (P,) pos/pos cosines; pn: (P, N) pos/neg cosine matrix
    # pn[i, j] matches reference ordering repeat_interleave(pos) x repeat(neg)
    pos_pos_examples_cos, pos_neg_cos_matrix = cosine_features(
        pos_enc_feat, pos_dec_feat, neg_dec_feat)

    if loss_func == "nce_loss":
        pos_neg_sum = pos_neg_cos_matrix.sum(-1)                           # (P,)
        examples_cos = pos_pos_examples_cos / pos_neg_sum
        nce_loss = jnp.mean(-jnp.log(examples_cos))
        return {"total_loss": positive_nll_loss + nce_loss,
                "nll_loss": positive_nll_loss, "nce_loss": nce_loss}
    elif loss_func == "pair_loss":
        # MarginRankingLoss(margin=0, reduction='sum') with target=+1:
        #   sum(max(0, -(pos_pos - pos_neg)))
        pair_loss = jnp.sum(jnp.maximum(
            0.0, pos_neg_cos_matrix - pos_pos_examples_cos[:, None]))
        return {"total_loss": positive_nll_loss + pair_loss,
                "nll_loss": positive_nll_loss, "pair_loss": pair_loss}
    else:
        raise NotImplementedError(f"{loss_func} is not implemented")


# ---------------------------------------------------------------------------
def init_params(key, hidden_size, vocab_size):
    ks = jax.random.split(key, 8)
    return {
        "embed": 0.1 * jax.random.normal(ks[0], (vocab_size, hidden_size), jnp.float32),
        "w_enc": 0.1 * jax.random.normal(ks[1], (hidden_size, hidden_size), jnp.float32),
        "b_enc": jnp.zeros((hidden_size,), jnp.float32),
        "w_dec": 0.1 * jax.random.normal(ks[2], (hidden_size, hidden_size), jnp.float32),
        "b_dec": jnp.zeros((hidden_size,), jnp.float32),
        "w_q": 0.1 * jax.random.normal(ks[3], (hidden_size, hidden_size), jnp.float32),
        "b_q": 0.01 * jax.random.normal(ks[4], (hidden_size,), jnp.float32),
        "w_k": 0.1 * jax.random.normal(ks[5], (hidden_size, hidden_size), jnp.float32),
        "b_k": 0.01 * jax.random.normal(ks[6], (hidden_size,), jnp.float32),
        "w_lm": 0.1 * jax.random.normal(ks[7], (hidden_size, vocab_size), jnp.float32),
    }


if __name__ == "__main__":
    VOCAB, HIDDEN, SEQ_Q, SEQ_K, BATCH = 64, 32, 8, 8, 4

    root = jax.random.PRNGKey(0)
    kp, k1, k2, k3 = jax.random.split(root, 4)
    params = init_params(kp, HIDDEN, VOCAB)

    query_ids = jax.random.randint(k1, (BATCH, SEQ_Q), 1, VOCAB, dtype=jnp.int32)
    query_ids = query_ids.at[0, -2:].set(PAD_ID).at[2, -1:].set(PAD_ID)

    knowledge_input_ids = jax.random.randint(k2, (BATCH, SEQ_K), 1, VOCAB, dtype=jnp.int32)
    knowledge_input_ids = knowledge_input_ids.at[1, -2:].set(PAD_ID).at[3, -1:].set(PAD_ID)

    knowledge_output_ids = jax.random.randint(k3, (BATCH, SEQ_K), 0, VOCAB, dtype=jnp.int32)

    p_n_tag = jnp.array([1, 1, 0, 0], dtype=jnp.int32)

    out = knowledge_generator_forward(params, query_ids, knowledge_input_ids,
                                      knowledge_output_ids, p_n_tag,
                                      loss_func="nce_loss")
    jax.block_until_ready(out["total_loss"])
    print("KERNEL_OK")
</pallas_src>

<mosaic_0001>
module attributes {stable_mosaic.version = 11 : i64} {
  func.func @_lm_ce_kernel(%arg0: i32, %arg1: i32, %arg2: memref<16x32xbf16, #tpu.memory_space<vmem>>, %arg3: memref<32x64xbf16, #tpu.memory_space<vmem>>, %arg4: memref<16x1xi32, #tpu.memory_space<vmem>>, %arg5: memref<16x1xf32, #tpu.memory_space<vmem>>, %arg6: memref<16x1xf32, #tpu.memory_space<vmem>>, %arg7: memref<16x1xf32, #tpu.memory_space<vmem>>, %arg8: memref<16x1xf32, #tpu.memory_space<vmem>>) attributes {dimension_semantics = [#tpu.dimension_semantics<parallel>, #tpu.dimension_semantics<arbitrary>], iteration_bounds = array<i64: 1, 1>, scalar_prefetch = 0 : i64, scratch_operands = 3 : i64, tpu.core_type = #tpu.core_type<tc>, window_params = [{transform_indices = @transform_0, window_bounds = array<i64: 16, 32>}, {transform_indices = @transform_1, window_bounds = array<i64: 32, 64>}, {transform_indices = @transform_2, window_bounds = array<i64: 16, 1>}, {transform_indices = @transform_3, window_bounds = array<i64: 16, 1>}]} {
    %c0_i32 = arith.constant 0 : i32
    %0 = arith.cmpi eq, %arg1, %c0_i32 : i32
    %1 = arith.extui %0 : i1 to i32
    %c0_i32_0 = arith.constant 0 : i32
    %2 = arith.cmpi ne, %1, %c0_i32_0 : i32
    scf.if %2 {
      %cst_23 = arith.constant 0xFF800000 : f32
      %40 = vector.broadcast %cst_23 : f32 to vector<16x1xf32>
      %c0_24 = arith.constant 0 : index
      %c0_25 = arith.constant 0 : index
      %41 = vector.load %arg6[%c0_24, %c0_25] : memref<16x1xf32, #tpu.memory_space<vmem>>, vector<16x1xf32>
      tpu.vector_store %arg6[%c0_24, %c0_25], %40 {strides = array<i32>} : memref<16x1xf32, #tpu.memory_space<vmem>>, vector<16x1xf32>,
      %cst_26 = arith.constant 0.000000e+00 : f32
      %42 = vector.broadcast %cst_26 : f32 to vector<16x1xf32>
      %c0_27 = arith.constant 0 : index
      %c0_28 = arith.constant 0 : index
      %43 = vector.load %arg7[%c0_27, %c0_28] : memref<16x1xf32, #tpu.memory_space<vmem>>, vector<16x1xf32>
      tpu.vector_store %arg7[%c0_27, %c0_28], %42 {strides = array<i32>} : memref<16x1xf32, #tpu.memory_space<vmem>>, vector<16x1xf32>,
      %cst_29 = arith.constant 0.000000e+00 : f32
      %44 = vector.broadcast %cst_29 : f32 to vector<16x1xf32>
      %c0_30 = arith.constant 0 : index
      %c0_31 = arith.constant 0 : index
      %45 = vector.load %arg8[%c0_30, %c0_31] : memref<16x1xf32, #tpu.memory_space<vmem>>, vector<16x1xf32>
      tpu.vector_store %arg8[%c0_30, %c0_31], %44 {strides = array<i32>} : memref<16x1xf32, #tpu.memory_space<vmem>>, vector<16x1xf32>,
    } else {
    }
    %c0 = arith.constant 0 : index
    %c0_1 = arith.constant 0 : index
    %3 = vector.load %arg2[%c0, %c0_1] : memref<16x32xbf16, #tpu.memory_space<vmem>>, vector<16x32xbf16>
    %c0_2 = arith.constant 0 : index
    %c0_3 = arith.constant 0 : index
    %4 = vector.load %arg3[%c0_2, %c0_3] : memref<32x64xbf16, #tpu.memory_space<vmem>>, vector<32x64xbf16>
    %c0_4 = arith.constant 0 : index
    %c0_5 = arith.constant 0 : index
    %5 = vector.load %arg4[%c0_4, %c0_5] : memref<16x1xi32, #tpu.memory_space<vmem>>, vector<16x1xi32>
    %cst = arith.constant dense<0.000000e+00> : vector<16x64xf32>
    %6 = tpu.matmul %3, %4, %cst {dimension_numbers = #tpu.dot_dimension_numbers<[1], [0], [0], [1], [0, 0, 1, 1], [], []>} : vector<16x32xbf16>, vector<32x64xbf16>, vector<16x64xf32> -> vector<16x64xf32>
    %7 = tpu.iota {dimensions = array<i32: 1>} : vector<16x64xi32>
    %c64_i32 = arith.constant 64 : i32
    %8 = arith.muli %arg1, %c64_i32 : i32
    %9 = vector.broadcast %8 : i32 to vector<16x64xi32>
    %10 = arith.addi %7, %9 : vector<16x64xi32>
    %11 = vector.broadcast %5 : vector<16x1xi32> to vector<16x64xi32>
    %12 = arith.cmpi eq, %10, %11 : vector<16x64xi32>
    %13 = arith.extui %12 : vector<16x64xi1> to vector<16x64xi32>
    %14 = arith.sitofp %13 : vector<16x64xi32> to vector<16x64xf32>
    %c0_6 = arith.constant 0 : index
    %c0_7 = arith.constant 0 : index
    %15 = vector.load %arg8[%c0_6, %c0_7] : memref<16x1xf32, #tpu.memory_space<vmem>>, vector<16x1xf32>
    %16 = arith.mulf %6, %14 : vector<16x64xf32>
    %cst_8 = arith.constant dense<0.000000e+00> : vector<16xf32>
    %17 = vector.multi_reduction <add>, %16, %cst_8 [1] : vector<16x64xf32> to vector<16xf32>
    %18 = vector.shape_cast %17 : vector<16xf32> to vector<16x1xf32>
    %19 = arith.addf %15, %18 : vector<16x1xf32>
    %c0_9 = arith.constant 0 : index
    %c0_10 = arith.constant 0 : index
    %20 = vector.load %arg8[%c0_9, %c0_10] : memref<16x1xf32, #tpu.memory_space<vmem>>, vector<16x1xf32>
    tpu.vector_store %arg8[%c0_9, %c0_10], %19 {strides = array<i32>} : memref<16x1xf32, #tpu.memory_space<vmem>>, vector<16x1xf32>,
    %c0_11 = arith.constant 0 : index
    %c0_12 = arith.constant 0 : index
    %21 = vector.load %arg6[%c0_11, %c0_12] : memref<16x1xf32, #tpu.memory_space<vmem>>, vector<16x1xf32>
    %cst_13 = arith.constant dense<0xFF800000> : vector<16xf32>
    %22 = vector.multi_reduction <maximumf>, %6, %cst_13 [1] : vector<16x64xf32> to vector<16xf32>
    %23 = vector.shape_cast %22 : vector<16xf32> to vector<16x1xf32>
    %24 = arith.maximumf %21, %23 : vector<16x1xf32>
    %c0_14 = arith.constant 0 : index
    %c0_15 = arith.constant 0 : index
    %25 = vector.load %arg7[%c0_14, %c0_15] : memref<16x1xf32, #tpu.memory_space<vmem>>, vector<16x1xf32>
    %26 = arith.subf %21, %24 : vector<16x1xf32>
    %27 = math.exp %26 : vector<16x1xf32>
    %28 = arith.mulf %25, %27 : vector<16x1xf32>
    %29 = vector.broadcast %24 : vector<16x1xf32> to vector<16x64xf32>
    %30 = arith.subf %6, %29 : vector<16x64xf32>
    %31 = math.exp %30 : vector<16x64xf32>
    %cst_16 = arith.constant dense<0.000000e+00> : vector<16xf32>
    %32 = vector.multi_reduction <add>, %31, %cst_16 [1] : vector<16x64xf32> to vector<16xf32>
    %33 = vector.shape_cast %32 : vector<16xf32> to vector<16x1xf32>
    %34 = arith.addf %28, %33 : vector<16x1xf32>
    %c0_17 = arith.constant 0 : index
    %c0_18 = arith.constant 0 : index
    %35 = vector.load %arg7[%c0_17, %c0_18] : memref<16x1xf32, #tpu.memory_space<vmem>>, vector<16x1xf32>
    tpu.vector_store %arg7[%c0_17, %c0_18], %34 {strides = array<i32>} : memref<16x1xf32, #tpu.memory_space<vmem>>, vector<16x1xf32>,
    %c0_19 = arith.constant 0 : index
    %c0_20 = arith.constant 0 : index
    %36 = vector.load %arg6[%c0_19, %c0_20] : memref<16x1xf32, #tpu.memory_space<vmem>>, vector<16x1xf32>
    tpu.vector_store %arg6[%c0_19, %c0_20], %24 {strides = array<i32>} : memref<16x1xf32, #tpu.memory_space<vmem>>, vector<16x1xf32>,
    %c0_i32_21 = arith.constant 0 : i32
    %37 = arith.cmpi eq, %arg1, %c0_i32_21 : i32
    %38 = arith.extui %37 : i1 to i32
    %c0_i32_22 = arith.constant 0 : i32
    %39 = arith.cmpi ne, %38, %c0_i32_22 : i32
    scf.if %39 {
      %c0_23 = arith.constant 0 : index
      %c0_24 = arith.constant 0 : index
      %40 = vector.load %arg6[%c0_23, %c0_24] : memref<16x1xf32, #tpu.memory_space<vmem>>, vector<16x1xf32>
      %c0_25 = arith.constant 0 : index
      %c0_26 = arith.constant 0 : index
      %41 = vector.load %arg7[%c0_25, %c0_26] : memref<16x1xf32, #tpu.memory_space<vmem>>, vector<16x1xf32>
      %42 = math.log %41 : vector<16x1xf32>
      %43 = arith.addf %40, %42 : vector<16x1xf32>
      %c-100_i32 = arith.constant -100 : i32
      %44 = vector.broadcast %c-100_i32 : i32 to vector<16x1xi32>
      %45 = arith.cmpi ne, %5, %44 : vector<16x1xi32>
      %46 = arith.extui %45 : vector<16x1xi1> to vector<16x1xi32>
      %47 = arith.sitofp %46 : vector<16x1xi32> to vector<16x1xf32>
      %c0_27 = arith.constant 0 : index
      %c0_28 = arith.constant 0 : index
      %48 = vector.load %arg8[%c0_27, %c0_28] : memref<16x1xf32, #tpu.memory_space<vmem>>, vector<16x1xf32>
      %49 = arith.subf %43, %48 : vector<16x1xf32>
      %50 = arith.mulf %49, %47 : vector<16x1xf32>
      %c0_29 = arith.constant 0 : index
      %c0_30 = arith.constant 0 : index
      %51 = vector.load %arg5[%c0_29, %c0_30] : memref<16x1xf32, #tpu.memory_space<vmem>>, vector<16x1xf32>
      tpu.vector_store %arg5[%c0_29, %c0_30], %50 {strides = array<i32>} : memref<16x1xf32, #tpu.memory_space<vmem>>, vector<16x1xf32>,
    } else {
    }
    return
  }
  func.func @transform_0(%arg0: i32, %arg1: i32) -> (i32, i32) {
    %c0_i32 = arith.constant 0 : i32
    %c0_i32_0 = arith.constant 0 : i32
    return %arg0, %c0_i32 : i32, i32
  }
  func.func @transform_1(%arg0: i32, %arg1: i32) -> (i32, i32) {
    %c0_i32 = arith.constant 0 : i32
    %c0_i32_0 = arith.constant 0 : i32
    return %c0_i32, %arg1 : i32, i32
  }
  func.func @transform_2(%arg0: i32, %arg1: i32) -> (i32, i32) {
    %c0_i32 = arith.constant 0 : i32
    %c0_i32_0 = arith.constant 0 : i32
    return %arg0, %c0_i32 : i32, i32
  }
  func.func @transform_3(%arg0: i32, %arg1: i32) -> (i32, i32) {
    %c0_i32 = arith.constant 0 : i32
    %c0_i32_0 = arith.constant 0 : i32
    return %arg0, %c0_i32 : i32, i32
  }
}

</mosaic_0001>

<bundles_post_ra>
// kernel: tpu_custom_call.1
= control target key start
LH: loop header
LB: loop body
LE: loop exit
PB: predicated region body
PF: predicated region fallthrough
CT: control target
= control target key end

     0   :  { %8 = vsyncpa [#allocation6], 0  ;;  %s290_s12 = smov [#allocation5]   ;;  %s386_s0 = inlined_call_operand.hbm [shape: bf16[16,32], index: 0, kind: input, shape index: {}]   ;;  %s387_s1 = inlined_call_operand.vmem [shape: bf16[32,64], index: 1, kind: input, shape index: {}]   ;;  %s388_s2 = inlined_call_operand.vmem [shape: s32[16,1], index: 2, kind: input, shape index: {}]   ;;  %s389_s3 = inlined_call_operand.vmem [shape: f32[16,1], index: 3, kind: output, shape index: {}]  }
   0x1   :  { %s14_s13 = sshll.u32 %s290_s12, 4  ;;  %s266_s16 = scalar_lea.hbm %s386_s0, 128  ;;  %s15_s13 = int_to_ptr.vmem [resolvable:$true] %s14_s13 }
   0x2   :  { %p267_p0 = scmp.ne.s32.totalorder %s386_s0, %s266_s16  ;;  %p270_p1 = scmp.lt.u32.totalorder %s266_s16, %s386_s0 }
   0x4   :  { %p272_p2 = pnand %p270_p1, %p267_p0 }
   0x6   :  { %275 = shalt.err (!%p272_p2)
}
   0x7   :  { %s276_s21 = scalar_lea.vmem %s15_s13, 128  ;;  %p281_p4 = scmp.lt.s32.totalorder %s15_s13, %s15_s13 }
   0x8   :  { %p277_p3 = scmp.ne.s32.totalorder %s15_s13, %s276_s21  ;;  %p282_p5 = scmp.lt.s32.totalorder %s276_s21, %s276_s21 }
   0xa   :  { %p283_p6 = por %p282_p5, %p281_p4 }
   0xc   :  { %p284_p7 = pnand %p283_p6, %p277_p3 }
   0xe   :  { %287 = shalt.err (!%p284_p7)
}
   0xf   :  { %s291_s22 = smov 64   ;;  %s292_s23 = smov 4  }
  0x10   :  { %20 = dma.hbm_to_vmem [thread:$0]  %s386_s0, 128, %s15_s13, [#allocation6], %s291_s22, %s291_s22, %s292_s23  }
  0x11   :  { %288 = dma.done.wait [#allocation6], 128  }
  0x12   :  { %289 = vsyncadd [#allocation6], 4294967168  ;;  %v293_v0 = vmov 0.0   ;;  %vm294_vm0 = vmmov 0   ;;  %v251_v1 = vld [vmem:[%s387_s1] sm:$0xff]   ;;  %v252_v2 = vld [vmem:[%s387_s1 + $0x8] sm:$0xff]   ;;  %v110_v20 = vlaneseq }
  0x13   :  { %234 = vmatprep.subr.bf16.mxu0 %v293_v0  ;;  %238 = vmatprep.mubr.msk.bf16.mxu0 %vm294_vm0, %v293_v0  ;;  %v253_v3 = vld [vmem:[#allocation5] sm:$0xff]   ;;  %vm65_vm1 = vcmask 261120   ;;  %v295_v4 = vmov 0   ;;  %vm33_vm2 = vcmask 7168   ;;  %v296_v5 = vmov -inf   ;;  %v353_v12 = vld [vmem:[%s388_s2] sm:$0xff] }
  0x14   :  { %235 = vmatpush3.bf16.msra.mxu0 %v251_v1  ;;  %250 = vset.pattern.permute.xlu0 %v295_v4  ;;  %34 = vst.msk [vmem:[#allocation2] sm:$0xff] %vm33_vm2, %v296_v5  ;;  %35 = vst.msk [vmem:[#allocation2 + $0x8] sm:$0xff] %vm33_vm2, %v296_v5  ;;  %vm131_vm3 = vcmask 523264   ;;  %v361_v22 = vld [vmem:[%s388_s2 + $0x8] sm:$0xff]  ;;  %v111_v23 = vand.u32 127, %v110_v20  ;;  %vm204_vm6 = vcmp.ne.s32.totalorder %v353_v12, 4294967196 }
  0x15   :  { %236 = vmatprep.subr.bf16.mxu0 %v293_v0  ;;  %249 = vset.pattern.permute.xlu1 %v295_v4  ;;  %36 = vst.msk [vmem:[#allocation3] sm:$0xff] %vm33_vm2, %v293_v0  ;;  %37 = vst.msk [vmem:[#allocation3 + $0x8] sm:$0xff] %vm33_vm2, %v293_v0  ;;  %v229_v4 = vsel %vm204_vm6, 1.0, %v293_v0  ;;  %vm205_vm7 = vcmp.ne.s32.totalorder %v361_v22, 4294967196 }
  0x16   :  { %38 = vst.msk [vmem:[#allocation4] sm:$0xff] %vm33_vm2, %v293_v0  ;;  %39 = vst.msk [vmem:[#allocation4 + $0x8] sm:$0xff] %vm33_vm2, %v293_v0 }
  0x18   :  { %237 = vmatpush3.bf16.msra.mxu0 %v252_v2 }
  0x1b   :  { %239 = vmatmul.mubr.msk.bf16.vlgmr.msra.gmra.mrb[0].mxu0 %vm65_vm1, %v253_v3  ;;  %v143_v13 = vld [vmem:[#allocation2] sm:$0xff]  ;;  %v144_v16 = vld [vmem:[#allocation2 + $0x8] sm:$0xff] }
  0x1c   :  { %v153_v48 = vld [vmem:[#allocation3] sm:$0xff]  ;;  %v154_v52 = vld [vmem:[#allocation3 + $0x8] sm:$0xff] }
  0x1d   :  { %v127_v42 = vld [vmem:[#allocation4] sm:$0xff]  ;;  %v128_v57 = vld [vmem:[#allocation4 + $0x8] sm:$0xff] }
  0xee   :  { %v103_v6 = vpop.f32.mrb[0].mxu0 }
  0xef   :  { %v240_v7 = vpop.f32.mrb[1].mxu0  ;;  %v145_v8 = vsel %vm131_vm3, %v103_v6, -inf }
  0xf0   :  { %146 = vmax.xlane.f32.xlu0 %v145_v8  ;;  %v106_v9 = vpop.f32.mrb[2].mxu0 }
  0xf1   :  { %v241_v10 = vpop.f32.mrb[3].mxu0  ;;  %v148_v11 = vsel %vm131_vm3, %v106_v9, -inf }
  0xf4   :  { %149 = vmax.xlane.f32.xlu0 %v148_v11  ;;  %v230_v11 = vsel %vm205_vm7, 1.0, %v293_v0 }
 0x10a   :  { %116 = vperm.xlu0 %250, %v353_v12  }
 0x17d   :  { %v147_v14 = vpop.xlane.xlu0 %146 }
 0x17e   :  { %v151_v15 = vmax.f32 %v143_v13, %v147_v14 }
 0x180   :  { %v155_v17 = vsub.f32 %v143_v13, %v151_v15  ;;  %189 = vst.msk [vmem:[#allocation2] sm:$0xff] %vm33_vm2, %v151_v15  ;;  %165 = vperm.xlu1 %249, %v151_v15  }
 0x181   :  { %v150_v18 = vpop.xlane.xlu0 %149 }
 0x182   :  { %v152_v19 = vmax.f32 %v144_v16, %v150_v18  ;;  %v157_v45 = vmul.f32 1.442695, %v155_v17 }
 0x184   :  { %v156_v21 = vsub.f32 %v144_v16, %v152_v19  ;;  %190 = vst.msk [vmem:[#allocation2 + $0x8] sm:$0xff] %vm33_vm2, %v152_v19  ;;  %170 = vperm.xlu1 %249, %v152_v19  }
 0x186   :  { %v159_v46 = vmul.f32 1.442695, %v156_v21 }
 0x187   :  { %v194_v1 = vld [vmem:[#allocation2] sm:$0xff] }
 0x188   :  { %119 = vperm.xlu1 %249, %v361_v22  }
 0x189   :  { %v117_v24 = vpop.permute.xlu0 %116 }
 0x18a   :  { %vm121_vm4 = vcmp.eq.s32.totalorder %v111_v23, %v117_v24 }
 0x18b   :  { %v227_v25 = vsel %vm121_vm4, 1.0, %v293_v0  ;;  %v195_v8 = vld [vmem:[#allocation2 + $0x8] sm:$0xff] }
 0x18c   :  { %v129_v26 = vmul.f32 %v227_v25, %v103_v6 }
 0x18e   :  { %v132_v27 = vsel %vm131_vm3, %v129_v26, 0.0 }
 0x18f   :  { %133 = vadd.xlane.f32.xlu0 %v132_v27 }
 0x1ff   :  { %v166_v28 = vpop.permute.xlu1 %165 }
 0x200   :  { %v173_v29 = vsub.f32 %v103_v6, %v166_v28 }
 0x202   :  { %v175_v30 = vmul.f32 1.442695, %v173_v29 }
 0x203   :  { %v171_v31 = vpop.permute.xlu1 %170 }
 0x204   :  { %254 = vpow2.f32 %v175_v30  ;;  %v174_v32 = vsub.f32 %v106_v9, %v171_v31 }
 0x206   :  { %v177_v33 = vmul.f32 1.442695, %v174_v32 }
 0x207   :  { %v120_v34 = vpop.permute.xlu1 %119 }
 0x208   :  { %256 = vpow2.f32 %v177_v33  ;;  %vm122_vm5 = vcmp.eq.s32.totalorder %v111_v23, %v120_v34 }
 0x209   :  { %v228_v37 = vsel %vm122_vm5, 1.0, %v293_v0  ;;  %258 = vpow2.f32 %v157_v45 }
 0x20a   :  { %v130_v40 = vmul.f32 %v228_v37, %v106_v9  ;;  %260 = vpow2.f32 %v159_v46 }
 0x20c   :  { %v135_v41 = vsel %vm131_vm3, %v130_v40, 0.0 }
 0x20e   :  { %v255_v35 = vpop.eup %254 }
 0x20f   :  { %v179_v36 = vsel %vm131_vm3, %v255_v35, 0.0 }
 0x210   :  { %180 = vadd.xlane.f32.xlu1 %v179_v36 }
 0x212   :  { %v257_v38 = vpop.eup %256 }
 0x213   :  { %v182_v39 = vsel %vm131_vm3, %v257_v38, 0.0  ;;  %v259_v47 = vpop.eup %258 }
 0x214   :  { %183 = vadd.xlane.f32.xlu1 %v182_v39  ;;  %v161_v49 = vmul.f32 %v259_v47, %v153_v48  ;;  %v261_v50 = vpop.eup %260 }
 0x215   :  { %v162_v54 = vmul.f32 %v261_v50, %v154_v52 }
 0x218   :  { %136 = vadd.xlane.f32.xlu1 %v135_v41 }
 0x21c   :  { %v134_v43 = vpop.xlane.xlu0 %133 }
 0x21d   :  { %v138_v44 = vadd.f32 %v134_v43, %v127_v42 }
 0x21f   :  { %141 = vst.msk [vmem:[#allocation4] sm:$0xff] %vm33_vm2, %v138_v44 }
 0x226   :  { %v210_v5 = vld [vmem:[#allocation4] sm:$0xff] }
 0x29d   :  { %v181_v51 = vpop.xlane.xlu1 %180 }
 0x29e   :  { %v185_v53 = vadd.f32 %v181_v51, %v161_v49 }
 0x2a0   :  { %187 = vst.msk [vmem:[#allocation3] sm:$0xff] %vm33_vm2, %v185_v53 }
 0x2a1   :  { %v184_v55 = vpop.xlane.xlu1 %183 }
 0x2a2   :  { %v186_v56 = vadd.f32 %v184_v55, %v162_v54 }
 0x2a4   :  { %188 = vst.msk [vmem:[#allocation3 + $0x8] sm:$0xff] %vm33_vm2, %v186_v56 }
 0x2a5   :  { %v137_v58 = vpop.xlane.xlu1 %136 }
 0x2a6   :  { %v139_v59 = vadd.f32 %v137_v58, %v128_v57 }
 0x2a7   :  { %v196_v60 = vld [vmem:[#allocation3] sm:$0xff] }
 0x2a8   :  { %262 = vlog2.f32 %v196_v60  ;;  %142 = vst.msk [vmem:[#allocation4 + $0x8] sm:$0xff] %vm33_vm2, %v139_v59 }
 0x2ab   :  { %v197_v61 = vld [vmem:[#allocation3 + $0x8] sm:$0xff] }
 0x2ac   :  { %264 = vlog2.f32 %v197_v61 }
 0x2af   :  { %v211_v13 = vld [vmem:[#allocation4 + $0x8] sm:$0xff] }
 0x2b2   :  { %v263_v62 = vpop.eup %262 }
 0x2b3   :  { %v199_v63 = vmul.f32 0.6931472, %v263_v62 }
 0x2b5   :  { %v202_v2 = vadd.f32 %v199_v63, %v194_v1 }
 0x2b6   :  { %v265_v3 = vpop.eup %264 }
 0x2b7   :  { %v212_v6 = vsub.f32 %v202_v2, %v210_v5  ;;  %v201_v7 = vmul.f32 0.6931472, %v265_v3 }
 0x2b9   :  { %v214_v9 = vmul.f32 %v229_v4, %v212_v6  ;;  %v203_v10 = vadd.f32 %v201_v7, %v195_v8 }
 0x2bb   :  { %216 = vst.msk [vmem:[%s389_s3] sm:$0xff] %vm33_vm2, %v214_v9  ;;  %v213_v12 = vsub.f32 %v203_v10, %v211_v13 }
 0x2bd   :  { %v215_v14 = vmul.f32 %v230_v11, %v213_v12 }
 0x2bf   :  { %217 = vst.msk [vmem:[%s389_s3 + $0x8] sm:$0xff] %vm33_vm2, %v215_v14 }
 0x2c0   :  { %222 = vsyncpa [#allocation6], 1 }

</bundles_post_ra>
